<compile_context>
chip_gen: v7x
topology: tpu7x:2x2x1
jax: 0.10.0
libtpu: 0.0.40
codegen_flags: <defaults>
</compile_context>

<pallas_src>
import jax
import jax.numpy as jnp
from jax.experimental import pallas as pl
from jax.experimental.pallas import tpu as pltpu

EPSILON = 1e-4


def bifpn_add3_kernel(w_ref, x0_ref, x1_ref, x2_ref, cw_ref, cb_ref, o_ref):
    # w_ref: (3,) BiFPN fusion weights in SMEM (scalar reads).
    w0 = w_ref[0]
    w1 = w_ref[1]
    w2 = w_ref[2]
    inv = 1.0 / (w0 + w1 + w2 + EPSILON)
    nw0 = w0 * inv
    nw1 = w1 * inv
    nw2 = w2 * inv

    # Blocks are (C1, t_hw): channels on sublanes, spatial on lanes (lane-dense).
    y = nw0 * x0_ref[...] + nw1 * x1_ref[...] + nw2 * x2_ref[...]
    # SiLU: x * sigmoid(x)   (sigmoid lowers to the EUP).
    y = y * jax.nn.sigmoid(y)
    # 1x1 conv == channel matmul: (C2, C1) @ (C1, t_hw) -> (C2, t_hw), f32 acc.
    out = jnp.dot(cw_ref[...], y, preferred_element_type=jnp.float32)
    o_ref[...] = (out + cb_ref[...]).astype(o_ref.dtype)


def _pick_spatial_tile(hw, c1, c2, target):
    """Pick a lane-dense spatial tile (multiple of 128) dividing HW, VMEM-bounded."""
    if hw % 128 != 0:
        # Block dim == full array dim is always a legal TPU layout; one spatial
        # block per batch element.
        return hw
    # Keep the double-buffered working set (3 inputs + 1 output, 2 buffers each)
    # well within v7x's 32 MiB scoped VMEM limit (~24 MiB budget).
    bytes_per_col = 4 * (3 * c1 + c2) * 2
    vmem_cap_cols = max(128, (24 * 1024 * 1024) // max(bytes_per_col, 1))
    t = min(target, hw, vmem_cap_cols)
    t = max(128, (t // 128) * 128)
    while hw % t != 0:      # terminates: 128 divides hw in this branch
        t -= 128
    return t


def bifpn_add3(x0_nchw, x1_nchw, x2_nchw, w, conv_w, conv_b, *, t_hw=2048):
    """BiFPN_Add3 forward.

    x*_nchw: (N, C1, H, W)
    w:       (3,) fusion weights
    conv_w:  (C2, C1)  -- torch Conv2d(c1, c2, 1).weight squeezed (no transpose needed)
    conv_b:  (C2,)
    returns  (N, C2, H, W)
    """
    N, C1, H, W = x0_nchw.shape
    C2 = conv_w.shape[0]
    HW = H * W

    # Free reshapes only -- no NCHW<->NHWC transposes.
    x0 = x0_nchw.reshape(N, C1, HW)
    x1 = x1_nchw.reshape(N, C1, HW)
    x2 = x2_nchw.reshape(N, C1, HW)
    bias = conv_b.reshape(C2, 1)

    t = _pick_spatial_tile(HW, C1, C2, t_hw)
    grid = (N, HW // t)

    x_spec = pl.BlockSpec((None, C1, t), lambda n, s: (n, 0, s))

    cost = pl.CostEstimate(
        flops=2 * N * HW * C1 * C2,
        transcendentals=N * HW * C1,
        bytes_accessed=4 * N * HW * (3 * C1 + C2) + 4 * (C1 * C2 + C2 + 3),
    )

    out_flat = pl.pallas_call(
        bifpn_add3_kernel,
        out_shape=jax.ShapeDtypeStruct((N, C2, HW), x0.dtype),
        grid=grid,
        in_specs=[
            pl.BlockSpec(memory_space=pltpu.MemorySpace.SMEM),   # w (3,)
            x_spec,                                              # x0 tile (C1, t)
            x_spec,                                              # x1 tile (C1, t)
            x_spec,                                              # x2 tile (C1, t)
            pl.BlockSpec((C2, C1), lambda n, s: (0, 0)),         # conv weight (resident)
            pl.BlockSpec((C2, 1), lambda n, s: (0, 0)),          # conv bias (resident)
        ],
        out_specs=pl.BlockSpec((None, C2, t), lambda n, s: (n, 0, s)),
        compiler_params=pltpu.CompilerParams(
            dimension_semantics=("parallel", "parallel")),
        cost_estimate=cost,
    )(w, x0, x1, x2, conv_w, bias)

    return out_flat.reshape(N, C2, H, W)


def bifpn_add3_reference(x0, x1, x2, w, conv_w, conv_b):
    weight = w / (jnp.sum(w) + EPSILON)
    y = weight[0] * x0 + weight[1] * x1 + weight[2] * x2
    y = y * jax.nn.sigmoid(y)
    # 1x1 conv in NCHW via einsum: conv_w is (C2, C1).
    out = jnp.einsum("dc,nchw->ndhw", conv_w, y) + conv_b[None, :, None, None]
    return out


if __name__ == "__main__":
    key = jax.random.PRNGKey(0)
    N, C1, C2, H, W = 2, 4, 4, 16, 16

    k0, k1, k2, kw, kb = jax.random.split(key, 5)
    x0 = jax.random.normal(k0, (N, C1, H, W), dtype=jnp.float32)
    x1 = jax.random.normal(k1, (N, C1, H, W), dtype=jnp.float32)
    x2 = jax.random.normal(k2, (N, C1, H, W), dtype=jnp.float32)

    # Module parameters: self.w = ones(3); Conv2d(c1, c2, 1) -> weight (C2,C1,1,1), bias (C2,)
    w = jnp.ones((3,), dtype=jnp.float32)
    conv_w = jax.random.normal(kw, (C2, C1), dtype=jnp.float32) * 0.1   # torch (C2,C1) layout
    conv_b = jax.random.normal(kb, (C2,), dtype=jnp.float32) * 0.1

    out = bifpn_add3(x0, x1, x2, w, conv_w, conv_b)
    out = jax.block_until_ready(out)

    ref = bifpn_add3_reference(x0, x1, x2, w, conv_w, conv_b)
    assert out.shape == (N, C2, H, W)
    assert jnp.allclose(out, ref, atol=1e-4, rtol=1e-4), "mismatch vs reference"

    print("KERNEL_OK")
</pallas_src>

<mosaic_0001>
module attributes {stable_mosaic.version = 11 : i64} {
  func.func @bifpn_add3_kernel(%arg0: i32, %arg1: i32, %arg2: memref<3xf32, #tpu.memory_space<smem>>, %arg3: memref<1x4x256xf32, #tpu.memory_space<vmem>>, %arg4: memref<1x4x256xf32, #tpu.memory_space<vmem>>, %arg5: memref<1x4x256xf32, #tpu.memory_space<vmem>>, %arg6: memref<4x4xf32, #tpu.memory_space<vmem>>, %arg7: memref<4x1xf32, #tpu.memory_space<vmem>>, %arg8: memref<1x4x256xf32, #tpu.memory_space<vmem>>) attributes {dimension_semantics = [#tpu.dimension_semantics<parallel>, #tpu.dimension_semantics<parallel>], iteration_bounds = array<i64: 2, 1>, scalar_prefetch = 0 : i64, scratch_operands = 0 : i64, tpu.core_type = #tpu.core_type<tc>, window_params = [{transform_indices = @transform_0, window_bounds = array<i64: 3>}, {transform_indices = @transform_1, window_bounds = array<i64: 1, 4, 256>}, {transform_indices = @transform_2, window_bounds = array<i64: 1, 4, 256>}, {transform_indices = @transform_3, window_bounds = array<i64: 1, 4, 256>}, {pipeline_mode = #tpu.pipeline_mode<synchronous>, transform_indices = @transform_4, window_bounds = array<i64: 4, 4>}, {pipeline_mode = #tpu.pipeline_mode<synchronous>, transform_indices = @transform_5, window_bounds = array<i64: 4, 1>}, {transform_indices = @transform_6, window_bounds = array<i64: 1, 4, 256>}]} {
    %c0 = arith.constant 0 : index
    %0 = memref.load %arg2[%c0] : memref<3xf32, #tpu.memory_space<smem>>
    %c1 = arith.constant 1 : index
    %1 = memref.load %arg2[%c1] : memref<3xf32, #tpu.memory_space<smem>>
    %c2 = arith.constant 2 : index
    %2 = memref.load %arg2[%c2] : memref<3xf32, #tpu.memory_space<smem>>
    %3 = arith.addf %0, %1 : f32
    %4 = arith.addf %3, %2 : f32
    %cst = arith.constant 9.99999974E-5 : f32
    %5 = arith.addf %4, %cst : f32
    %cst_0 = arith.constant 1.000000e+00 : f32
    %6 = arith.divf %cst_0, %5 : f32
    %7 = arith.mulf %0, %6 : f32
    %8 = arith.mulf %1, %6 : f32
    %9 = arith.mulf %2, %6 : f32
    %c0_1 = arith.constant 0 : index
    %c0_2 = arith.constant 0 : index
    %c0_3 = arith.constant 0 : index
    %10 = vector.load %arg3[%c0_1, %c0_2, %c0_3] : memref<1x4x256xf32, #tpu.memory_space<vmem>>, vector<1x4x256xf32>
    %11 = vector.shape_cast %10 : vector<1x4x256xf32> to vector<4x256xf32>
    %12 = vector.broadcast %7 : f32 to vector<4x256xf32>
    %13 = arith.mulf %12, %11 : vector<4x256xf32>
    %c0_4 = arith.constant 0 : index
    %c0_5 = arith.constant 0 : index
    %c0_6 = arith.constant 0 : index
    %14 = vector.load %arg4[%c0_4, %c0_5, %c0_6] : memref<1x4x256xf32, #tpu.memory_space<vmem>>, vector<1x4x256xf32>
    %15 = vector.shape_cast %14 : vector<1x4x256xf32> to vector<4x256xf32>
    %16 = vector.broadcast %8 : f32 to vector<4x256xf32>
    %17 = arith.mulf %16, %15 : vector<4x256xf32>
    %18 = arith.addf %13, %17 : vector<4x256xf32>
    %c0_7 = arith.constant 0 : index
    %c0_8 = arith.constant 0 : index
    %c0_9 = arith.constant 0 : index
    %19 = vector.load %arg5[%c0_7, %c0_8, %c0_9] : memref<1x4x256xf32, #tpu.memory_space<vmem>>, vector<1x4x256xf32>
    %20 = vector.shape_cast %19 : vector<1x4x256xf32> to vector<4x256xf32>
    %21 = vector.broadcast %9 : f32 to vector<4x256xf32>
    %22 = arith.mulf %21, %20 : vector<4x256xf32>
    %23 = arith.addf %18, %22 : vector<4x256xf32>
    %24 = arith.negf %23 : vector<4x256xf32>
    %25 = math.exp %24 : vector<4x256xf32>
    %cst_10 = arith.constant 1.000000e+00 : f32
    %26 = vector.broadcast %cst_10 : f32 to vector<4x256xf32>
    %27 = arith.addf %26, %25 : vector<4x256xf32>
    %28 = arith.divf %26, %27 : vector<4x256xf32>
    %29 = arith.mulf %23, %28 : vector<4x256xf32>
    %c0_11 = arith.constant 0 : index
    %c0_12 = arith.constant 0 : index
    %30 = vector.load %arg6[%c0_11, %c0_12] : memref<4x4xf32, #tpu.memory_space<vmem>>, vector<4x4xf32>
    %cst_13 = arith.constant dense<0.000000e+00> : vector<4x256xf32>
    %31 = tpu.matmul %30, %29, %cst_13 {dimension_numbers = #tpu.dot_dimension_numbers<[1], [0], [0], [1], [0, 0, 1, 1], [], []>} : vector<4x4xf32>, vector<4x256xf32>, vector<4x256xf32> -> vector<4x256xf32>
    %c0_14 = arith.constant 0 : index
    %c0_15 = arith.constant 0 : index
    %32 = vector.load %arg7[%c0_14, %c0_15] : memref<4x1xf32, #tpu.memory_space<vmem>>, vector<4x1xf32>
    %33 = vector.broadcast %32 : vector<4x1xf32> to vector<4x256xf32>
    %34 = arith.addf %31, %33 : vector<4x256xf32>
    %c0_16 = arith.constant 0 : index
    %c0_17 = arith.constant 0 : index
    %c0_18 = arith.constant 0 : index
    %35 = vector.load %arg8[%c0_16, %c0_17, %c0_18] : memref<1x4x256xf32, #tpu.memory_space<vmem>>, vector<1x4x256xf32>
    %36 = vector.shape_cast %35 : vector<1x4x256xf32> to vector<4x256xf32>
    %37 = vector.shape_cast %34 : vector<4x256xf32> to vector<1x4x256xf32>
    tpu.vector_store %arg8[%c0_16, %c0_17, %c0_18], %37 {strides = array<i32>} : memref<1x4x256xf32, #tpu.memory_space<vmem>>, vector<1x4x256xf32>,
    return
  }
  func.func @transform_0(%arg0: i32, %arg1: i32) -> i32 {
    %c0_i32 = arith.constant 0 : i32
    %c0_i32_0 = arith.constant 0 : i32
    return %c0_i32 : i32
  }
  func.func @transform_1(%arg0: i32, %arg1: i32) -> (i32, i32, i32) {
    %c0_i32 = arith.constant 0 : i32
    %c0_i32_0 = arith.constant 0 : i32
    return %arg0, %c0_i32, %arg1 : i32, i32, i32
  }
  func.func @transform_2(%arg0: i32, %arg1: i32) -> (i32, i32, i32) {
    %c0_i32 = arith.constant 0 : i32
    %c0_i32_0 = arith.constant 0 : i32
    return %arg0, %c0_i32, %arg1 : i32, i32, i32
  }
  func.func @transform_3(%arg0: i32, %arg1: i32) -> (i32, i32, i32) {
    %c0_i32 = arith.constant 0 : i32
    %c0_i32_0 = arith.constant 0 : i32
    return %arg0, %c0_i32, %arg1 : i32, i32, i32
  }
  func.func @transform_4(%arg0: i32, %arg1: i32) -> (i32, i32) {
    %c0_i32 = arith.constant 0 : i32
    %c0_i32_0 = arith.constant 0 : i32
    %c0_i32_1 = arith.constant 0 : i32
    return %c0_i32, %c0_i32_0 : i32, i32
  }
  func.func @transform_5(%arg0: i32, %arg1: i32) -> (i32, i32) {
    %c0_i32 = arith.constant 0 : i32
    %c0_i32_0 = arith.constant 0 : i32
    %c0_i32_1 = arith.constant 0 : i32
    return %c0_i32, %c0_i32_0 : i32, i32
  }
  func.func @transform_6(%arg0: i32, %arg1: i32) -> (i32, i32, i32) {
    %c0_i32 = arith.constant 0 : i32
    %c0_i32_0 = arith.constant 0 : i32
    return %arg0, %c0_i32, %arg1 : i32, i32, i32
  }
}

</mosaic_0001>

<bundles_post_ra>
// kernel: tpu_custom_call.1
= control target key start
LH: loop header
LB: loop body
LE: loop exit
PB: predicated region body
PF: predicated region fallthrough
CT: control target
= control target key end

     0   :  { %s1270_s0 = inlined_call_operand.hbm [shape: f32[3], index: 0, kind: input, shape index: {}]   ;;  %s1271_s1 = inlined_call_operand.hbm [shape: f32[2,4,256], index: 1, kind: input, shape index: {}]   ;;  %s1272_s2 = inlined_call_operand.hbm [shape: f32[2,4,256], index: 2, kind: input, shape index: {}]   ;;  %s1273_s3 = inlined_call_operand.vmem [shape: f32[2,4,256], index: 3, kind: input, shape index: {}]   ;;  %s1274_s4 = inlined_call_operand.vmem [shape: f32[4,4], index: 4, kind: input, shape index: {}]   ;;  %s1275_s5 = inlined_call_operand.vmem [shape: f32[4,1], index: 5, kind: input, shape index: {}]   ;;  %s1276_s6 = inlined_call_operand.hbm [shape: f32[2,4,256], index: 6, kind: output, shape index: {}]  }
   0x1   :  { %1286 = sst [smem:[#allocation17_spill]] %s1270_s0 }
   0x2   :  { %1287 = sst [smem:[#allocation18_spill]] %s1271_s1 }
   0x3   :  { %11 = vsyncpa [#allocation5], 0 }
   0x4   :  { %12 = vsyncpa [#allocation3], 0 }
   0x5   :  { %14 = vsyncpa [#allocation3 + $0x1], 0 }
   0x6   :  { %15 = vsyncpa [#allocation8], 0 }
   0x7   :  { %17 = vsyncpa [#allocation8 + $0x1], 0 }
   0x8   :  { %18 = vsyncpa [#allocation4], 0 }
   0x9   :  { %20 = vsyncpa [#allocation4 + $0x1], 0  ;;  %s988_s21 = smov 0   ;;  %s990_s22 = smov 0  }
   0xa   :  { %s992_s23 = smov 0   ;;  %s994_s24 = smov 0  }
   0xb   :  { %s996_s25 = smov 0   ;;  %s998_s26 = smov 0  }
   0xc LB: > { %1288 = sst [smem:[#allocation14_spill]] %s925_s21  ;;  %s660_s27 = sadd.s32 4294967295, %s945_s26   ;;  %s945_s26 = sphi %s998_s26, %s26_s26   ;;  %s941_s25 = sphi %s996_s25, %s1316_s25   ;;  %s937_s24 = sphi %s994_s24, %s1315_s24   ;;  %s933_s23 = sphi %s992_s23, %s1314_s23   ;;  %s929_s22 = sphi %s990_s22, %s1313_s22   ;;  %s925_s21 = sphi %s988_s21, %s1312_s21  }
   0xd   : > { %s661_s28 = sadd.s32 4294967294, %s945_s26   ;;  %p75_p0 = scmp.ne.s32.totalorder %s933_s23, %s929_s22 }
   0xe   : > { %p81_p1 = scmp.ne.s32.totalorder %s929_s22, %s925_s21  ;;  %p1024_p2 = scmp.eq.s32.totalorder %s660_s27, 0 }
   0xf   : > { %p205_p3 = scmp.eq.s32.totalorder %s660_s27, 1  ;;  %p211_p4 = scmp.eq.s32.totalorder %s661_s28, 1 }
  0x10   : > { %s1289_s29 = scalar_select %p1024_p2, 1, 0 }
  0x11   : > { %p662_p5 = scmp.ge.s32.totalorder %s945_s26, 1  ;;  %p1031_p6 = por %p1024_p2, %p81_p1 }
  0x12   : > { %p1038_p7 = por %p205_p3, %p75_p0  ;;  %p1042_p8 = por %p211_p4, %p81_p1 }
  0x13   : > { %s1290_s30 = scalar_select %p1031_p6, 1, 0 }
  0x14   : > { %s1291_s7 = scalar_select %p1038_p7, 1, 0 }
  0x15   : > { %s1292_s8 = scalar_select %p1042_p8, 1, 0 }
  0x16   : > { %p218_p9 = scmp.lt.s32.totalorder %s945_s26, 3  ;;  %s68_s10 = sadd.s32 1, %s933_s23 }
  0x17   : > { %1293 = sst [smem:[#allocation15_spill]] %s1292_s8  ;;  %s38_s11 = sadd.s32 1, %s941_s25 }
  0x18   : > { %p1047_p10 = pnand %p662_p5, %p218_p9  ;;  %p76_p13 = scmp.eq.s32.totalorder %s945_s26, 0 }
  0x19   : > { %p1063_p1 = scmp.ge.s32.totalorder %s38_s11, 2  ;;  %p721_p5 = scmp.lt.s32.totalorder %s945_s26, 2 }
  0x1a   : > { %s1294_s9 = scalar_select %p1047_p10, 1, 0 }
  0x1b   : > { %p705_p12 = pneg %p1047_p10  ;;  %p1070_p4 = por %p76_p13, %p75_p0 }
  0x1c   : > { %s1076_s15 = sand.u32 1, %s933_s23   ;;  %s1298_s0 = sld [smem:[#allocation17_spill]] }
  0x1d   : > { %p1059_p3 = pnand %p705_p12, %p1024_p2 }
  0x1f   : > { %p784_p12 = pneg %p1059_p3 }
  0x22   : > { %s782_s18 = scalar_lea.hbm %s1298_s0, 16 }
  0x23   : > { %p783_p9 = scmp.ne.s32.totalorder %s1298_s0, %s782_s18  ;;  %p789_p0 = scmp.lt.u32.totalorder %s782_s18, %s1298_s0 }
  0x25   : > { %p785_p11 = pnand %p784_p12, %p783_p9 }
  0x27   : > { %p786_p8 = pneg %p785_p11 }
  0x29   : > { %p791_p13 = pnand %p789_p0, %p786_p8 }
  0x2b   : > { %794 = shalt.err (!%p791_p13)
}
  0x2c   : > { %s947_s8 = smov [#allocation2]   ;;  %s1318_s11 = smov (%p1063_p1, %s38_s11), 0 }
  0x2d   : > { %708 = dma.hbm_to_smem (!%p1059_p3), %s1298_s0, 16, %s947_s8, [#allocation5]  }
  0x2e   : > { %1299 = sst [smem:[#allocation16_spill]] %s1318_s11  ;;  %s1279_s17 = sshll.u32 %s1076_s15, 3 }
  0x2f   : > { %s63_s18 = ssub.s32 %s941_s25, %s1318_s11  ;;  %s689_s12 = sshll.u32 %s941_s25, 7 }
  0x30   : > { %p66_p8 = scmp.eq.s32.totalorder %s63_s18, 0  ;;  %s1300_s1 = sld [smem:[#allocation18_spill]] }
  0x31   : > { %s250_s27 = scalar_lea.vmem [#allocation6], %s1279_s17  ;;  %p1118_p11 = pnand %p721_p5, %p1070_p4 }
  0x32   : > { %s260_s8 = sshll.u32 %s250_s27, 4  ;;  %s1125_s19 = scalar_lea.hbm %s1272_s2, %s689_s12  ;;  %s1112_s8 = int_to_ptr.vmem [resolvable:$true] %s260_s8 }
  0x33   : > { %s1110_s13 = scalar_select %p66_p8, %s933_s23, %s68_s10  }
  0x34   : > { %s247_s21 = scalar_lea.sflag [#allocation3], %s1076_s15  ;;  %p797_p1 = pneg %p1118_p11 }
  0x36   : > { %s1105_s20 = scalar_lea.hbm %s1300_s1, %s689_s12  ;;  %s800_s27 = scalar_lea.hbm %s1300_s1, 256 }
  0x37   : > { %s795_s17 = scalar_lea.hbm %s1105_s20, 128  ;;  %p801_p4 = scmp.lt.u32.totalorder %s1105_s20, %s1300_s1 }
  0x38   : > { %p796_p3 = scmp.ne.s32.totalorder %s1105_s20, %s795_s17  ;;  %p802_p5 = scmp.lt.u32.totalorder %s800_s27, %s795_s17 }
  0x39   : > { %p804_p13 = scmp.lt.u32.totalorder %s795_s17, %s1105_s20 }
  0x3a   : > { %p798_p9 = pnand %p797_p1, %p796_p3  ;;  %p803_p0 = por %p802_p5, %p801_p4 }
  0x3c   : > { %p799_p12 = pneg %p798_p9  ;;  %p805_p8 = por %p804_p13, %p803_p0 }
  0x3e   : > { %p806_p7 = pnand %p805_p8, %p799_p12 }
  0x40   : > { %809 = shalt.err (!%p806_p7)
}
  0x41   : > { %s810_s12 = scalar_lea.vmem %s1112_s8, 128  ;;  %s948_s16 = smov [#allocation6]  }
  0x42   : > { %p811_p3 = scmp.ne.s32.totalorder %s1112_s8, %s810_s12  ;;  %s815_s18 = sshll.u32 %s948_s16, 4  ;;  %s816_s18 = int_to_ptr.vmem [resolvable:$false] %s815_s18 }
  0x43   : > { %s817_s0 = scalar_lea.vmem %s816_s18, 256  ;;  %p818_p2 = scmp.lt.s32.totalorder %s1112_s8, %s816_s18 }
  0x44   : > { %p813_p9 = pnand %p811_p3, %p797_p1  ;;  %p819_p4 = scmp.lt.s32.totalorder %s817_s0, %s810_s12 }
  0x46   : > { %p814_p6 = pneg %p813_p9  ;;  %p820_p5 = por %p819_p4, %p818_p2 }
  0x48   : > { %p821_p0 = pnand %p820_p5, %p814_p6 }
  0x4a   : > { %824 = shalt.err (!%p821_p0)
}
  0x4b   : > { %712 = dma.hbm_to_vmem [thread:$0]  (!%p1118_p11), %s1105_s20, 128, %s1112_s8, %s247_s21  }
  0x4c   : > { %s1302_s11 = sshll.u32 %s1076_s15, 3  ;;  %s268_s14 = scalar_lea.sflag [#allocation8], %s1076_s15 }
  0x4d   : > { %s271_s17 = scalar_lea.vmem [#allocation7], %s1302_s11  ;;  %s825_s27 = scalar_lea.hbm %s1125_s19, 128 }
  0x4e   : > { %s281_s10 = sshll.u32 %s271_s17, 4  ;;  %p826_p2 = scmp.ne.s32.totalorder %s1125_s19, %s825_s27  ;;  %s282_s10 = int_to_ptr.vmem [resolvable:$true] %s281_s10 }
  0x4f   : > { %s830_s18 = scalar_lea.hbm %s1272_s2, 256  ;;  %p831_p12 = scmp.lt.u32.totalorder %s1125_s19, %s1272_s2 }
  0x50   : > { %p828_p6 = pnand %p826_p2, %p797_p1  ;;  %p832_p13 = scmp.lt.u32.totalorder %s830_s18, %s825_s27 }
  0x51   : > { %p834_p3 = scmp.lt.u32.totalorder %s825_s27, %s1125_s19 }
  0x52   : > { %p829_p7 = pneg %p828_p6  ;;  %p833_p8 = por %p832_p13, %p831_p12 }
  0x54   : > { %p835_p9 = por %p834_p3, %p833_p8 }
  0x56   : > { %p836_p4 = pnand %p835_p9, %p829_p7 }
  0x58   : > { %839 = shalt.err (!%p836_p4)
}
  0x59   : > { %s840_s15 = scalar_lea.vmem %s282_s10, 128  ;;  %s949_s20 = smov [#allocation7]  }
  0x5a   : > { %p841_p5 = scmp.ne.s32.totalorder %s282_s10, %s840_s15  ;;  %s845_s8 = sshll.u32 %s949_s20, 4  ;;  %s846_s8 = int_to_ptr.vmem [resolvable:$false] %s845_s8 }
  0x5b   : > { %s847_s21 = scalar_lea.vmem %s846_s8, 256  ;;  %p848_p6 = scmp.lt.s32.totalorder %s282_s10, %s846_s8 }
  0x5c   : > { %p843_p0 = pnand %p841_p5, %p797_p1  ;;  %p849_p10 = scmp.lt.s32.totalorder %s847_s21, %s840_s15 }
  0x5e   : > { %p844_p2 = pneg %p843_p0  ;;  %p850_p12 = por %p849_p10, %p848_p6 }
  0x60   : > { %p851_p13 = pnand %p850_p12, %p844_p2 }
  0x62   : > { %854 = shalt.err (!%p851_p13)
}
  0x63   : > { %715 = dma.hbm_to_vmem [thread:$0]  (!%p1118_p11), %s1125_s19, 128, %s282_s10, %s268_s14  }
  0x64   : > { %p1303_p7 = scmp.ne.s32.totalorder %s1294_s9, 0 }
  0x65   : > { %p1304_p8 = scmp.ne.s32.totalorder (!%p1303_p7), %s1289_s29, 0 }
  0x66   : > { %303 = sbr.rel (%p1303_p7) target bundleno = 465 (0x1d1), region = 44 }
  0x6d   : > { %908 = dma.done.wait (%p1304_p8), [#allocation5], 16  }
  0x6e   : > { %910 = vsyncadd (%p1304_p8), [#allocation5], 4294967280  ;;  %s1182_s1 = sand.u32 1, %s929_s22   ;;  %p1305_p10 = scmp.ne.s32.totalorder %s1290_s30, 0 }
  0x6f   : > { %s1185_s11 = sshll.u32 %s1182_s1, 3  ;;  %s310_s28 = scalar_lea.sflag [#allocation3], %s1182_s1 }
  0x70   : > { %s313_s19 = scalar_lea.vmem [#allocation6], %s1185_s11 }
  0x71   : > { %912 = dma.done.wait (%p1305_p10), %s310_s28, 128  }
  0x72   : > { %914 = vsyncadd (%p1305_p10), %s310_s28, 4294967168  ;;  %s319_s29 = scalar_lea.sflag [#allocation8], %s1182_s1  ;;  %s322_s9 = scalar_lea.vmem [#allocation7], %s1185_s11 }
  0x73   : > { %916 = dma.done.wait (%p1305_p10), %s319_s29, 128  }
  0x74   : > { %918 = vsyncadd (%p1305_p10), %s319_s29, 4294967168 }
  0x75   : > { %327 = sfence }
  0x76   : > { %s379_s17 = sld [smem:[#allocation2]]  ;;  %s678_s10 = sld [smem:[#allocation2 + $0x1]]  ;;  %v950_v0 = vmov 0.0   ;;  %v410_v1 = vld [vmem:[%s1275_s5] sm:$0xf]  ;;  %v951_v2 = vmov 0  }
  0x77   : > { %s1199_s14 = sld [smem:[#allocation2 + $0x2]]  ;;  %491 = vmatprep.mubr.f32.mxu0 %v950_v0  ;;  %775 = vset.pattern.permute.xlu0 %v951_v2  ;;  %p369_p11 = scmp.lt.s32.totalorder %s937_s24, 1  ;;  %v391_v5 = vld [vmem:[%s313_s19] sm:$0xff]  ;;  %v394_v6 = vld [vmem:[%s322_s9] sm:$0xff]  ;;  %vm422_vm0 = vcmask 1043456   ;;  %vm418_vm1 = vcmask 31744  }
  0x78   : > { %413 = vperm.xlu0 %775, %v410_v1   ;;  %v409_v22 = vld [vmem:[%s1274_s4] sm:$0xf]  ;;  %p1306_p3 = scmp.ne.s32.totalorder %s1291_s7, 0 }
  0x79   : > { %s370_s0 = scalar_select %p369_p11, %s937_s24, 1 }
  0x7b   : > { %s691_s15 = sshll.u32 %s370_s0, 3  ;;  %s504_s0 = scalar_lea.sflag [#allocation4], %s1182_s1 }
  0x7c   : > { %s382_s30 = sadd.f32 %s678_s10, %s379_s17  ;;  %s376_s28 = scalar_lea.vmem %s1273_s3, %s691_s15 }
  0x7d   : > { %v398_v10 = vld [vmem:[%s376_s28] sm:$0xff] }
  0x7e   : > { %s383_s16 = sadd.f32 %s1199_s14, %s382_s30 }
  0x80   : > { %s384_s18 = sadd.f32 0.0001, %s383_s16 }
  0x82   : > { %v385_v3 = vstv %s384_s18 }
  0x83   : > { %776 = vrcp.f32 %v385_v3 }
  0x8d   : > { %v777_v4 = vpop.eup %776 }
  0x8e   : > { %693 = vpush %v777_v4 }
  0xbf   : > { %s694_s20 = spop %693 }
  0xc0   : > { %s388_s29 = smul.f32 %s694_s20, %s379_s17  ;;  %s692_s17 = sshll.u32 %s937_s24, 7 }
  0xc1   : > { %s389_s27 = smul.f32 %s694_s20, %s678_s10  ;;  %s365_s10 = scalar_lea.vmem [#allocation9], %s1185_s11 }
  0xc2   : > { %s390_s12 = smul.f32 %s694_s20, %s1199_s14  ;;  %v392_v7 = vstv %s388_s29  ;;  %s520_s14 = sshll.u32 %s365_s10, 4  ;;  %s1223_s14 = int_to_ptr.vmem [resolvable:$true] %s520_s14 }
  0xc3   : > { %v393_v8 = vmul.f32 %v392_v7, %v391_v5  ;;  %v395_v9 = vstv %s389_s27  ;;  %s1221_s18 = scalar_lea.hbm %s1276_s6, %s692_s17  ;;  %s855_s15 = scalar_lea.vmem %s1223_s14, 128 }
  0xc4   : > { %v396_v11 = vmul.f32 %v395_v9, %v394_v6  ;;  %v399_v12 = vstv %s390_s12  ;;  %p856_p1 = scmp.ne.s32.totalorder %s1223_s14, %s855_s15  ;;  %s952_s24 = smov [#allocation9]  }
  0xc5   : > { %v400_v14 = vmul.f32 %v399_v12, %v398_v10  ;;  %s859_s11 = sshll.u32 %s952_s24, 4  ;;  %s860_s11 = int_to_ptr.vmem [resolvable:$false] %s859_s11 }
  0xc6   : > { %v397_v13 = vadd.f32 %v396_v11, %v393_v8  ;;  %p857_p9 = pnand %p856_p1, %p1306_p3  ;;  %s861_s20 = scalar_lea.vmem %s860_s11, 256 }
  0xc7   : > { %p862_p5 = scmp.lt.s32.totalorder %s1223_s14, %s860_s11  ;;  %p863_p0 = scmp.lt.s32.totalorder %s861_s20, %s855_s15 }
  0xc8   : > { %v401_v15 = vadd.f32 %v400_v14, %v397_v13  ;;  %p858_p4 = pneg %p857_p9 }
  0xc9   : > { %p864_p2 = por %p863_p0, %p862_p5 }
  0xca   : > { %v680_v16 = vmul.f32 -1.442695, %v401_v15 }
  0xcb   : > { %p865_p6 = pnand %p864_p2, %p858_p4 }
  0xcc   : > { %778 = vpow2.f32 %v680_v16 }
  0xd6   : > { %v779_v17 = vpop.eup %778 }
  0xd7   : > { %v405_v18 = vadd.f32 1.0, %v779_v17 }
  0xd9   : > { %780 = vrcp.f32 %v405_v18 }
  0xe3   : > { %v781_v19 = vpop.eup %780 }
  0xe4   : > { %v408_v20 = vmul.f32 %v781_v19, %v401_v15 }
  0xe6   : > { %v417_v21 = vcombine.high %v408_v20, %v408_v20 }
  0xe8   : > { %681 = vmatprep.subr.msk.mxu0 %vm422_vm0, %v417_v21 }
  0xe9   : > { %682 = vmatpush1.msk.msra.mxu0 %vm422_vm0, %v408_v20 }
  0xea   : > { %683 = vmatmul.mubr.msk.f32.vlgmr.msra.gmra.mrb[0].mxu0 %vm418_vm1, %v409_v22 }
  0xf7   : > { %v414_v23 = vpop.permute.xlu0 %413 }
 0x1bd   : > { %v493_v24 = vpop.f32.mrb[0].mxu0 }
 0x1be   : > { %v494_v25 = vadd.f32 %v493_v24, %v414_v23  ;;  %v495_v26 = vpop.f32.mrb[1].mxu0 }
 0x1bf   : > { %v496_v27 = vadd.f32 %v495_v26, %v414_v23 }
 0x1c1   : > { %v500_v28 = vcombine.low %v494_v25, %v496_v27 }
 0x1c3   : > { %502 = vst [vmem:[%s365_s10] sm:$0xff] %v500_v28 }
 0x1c4   : > { %868 = shalt.err (!%p865_p6)
}
 0x1c5   : > { %s869_s1 = scalar_lea.hbm %s1221_s18, 128  ;;  %s873_s28 = scalar_lea.hbm %s1276_s6, 256 }
 0x1c6   : > { %p870_p12 = scmp.ne.s32.totalorder %s1221_s18, %s869_s1  ;;  %p874_p8 = scmp.lt.u32.totalorder %s1221_s18, %s1276_s6 }
 0x1c7   : > { %p875_p10 = scmp.lt.u32.totalorder %s873_s28, %s869_s1  ;;  %p877_p1 = scmp.lt.u32.totalorder %s869_s1, %s1221_s18 }
 0x1c8   : > { %p871_p13 = pnand %p870_p12, %p1306_p3 }
 0x1c9   : > { %p876_p11 = por %p875_p10, %p874_p8 }
 0x1ca   : > { %p872_p7 = pneg %p871_p13 }
 0x1cb   : > { %p878_p9 = por %p877_p1, %p876_p11 }
 0x1cd   : > { %p879_p4 = pnand %p878_p9, %p872_p7 }
 0x1cf   : > { %882 = shalt.err (!%p879_p4)
}
 0x1d0   : > { %703 = dma.vmem_to_hbm [thread:$0]  (%p1306_p3), %s1223_s14, 128, %s1221_s18, %s504_s0  }
 0x1d1 PF: > { %s1307_s12 = sld [smem:[#allocation14_spill]]  ;;  %s1308_s19 = sld [smem:[#allocation15_spill]] }
 0x1d2   : > { %p1310_p0 = scmp.ge.s32.totalorder %s945_s26, 2 }
 0x1d7   : > { %s532_s9 = sand.u32 1, %s1307_s12   ;;  %p1309_p5 = scmp.ne.s32.totalorder %s1308_s19, 0 }
 0x1d8   : > { %s533_s17 = scalar_lea.sflag [#allocation4], %s532_s9 }
 0x1d9   : > { %p717_p2 = pnand %p1310_p0, %p1309_p5 }
 0x1db   : > { %920 = dma.done.wait (!%p717_p2), %s533_s17, 128  }
 0x1dc   : > { %922 = vsyncadd (!%p717_p2), %s533_s17, 4294967168  ;;  %s26_s26 = sadd.s32 1, %s945_s26   ;;  %s1311_s7 = sld [smem:[#allocation16_spill]] }
 0x1dd   : > { %p23_p6 = scmp.ge.s32.totalorder %s26_s26, 4   ;;  %s1312_s21 = smov %s929_s22 }
 0x1de   : > { %s1313_s22 = smov %s933_s23  ;;  %s1314_s23 = smov %s1110_s13 }
 0x1df   : > { %s1315_s24 = smov %s941_s25  ;;  %25 = sbr.rel (!%p23_p6) target bundleno = 12 (0xc), region = 110 }
 0x1e2   : > { %s1316_s25 = smov %s1311_s7 }
 0x1e6   :  { %538 = vsyncpa [#allocation3], 1 }
 0x1e7   :  { %540 = vsyncpa [#allocation3 + $0x1], 1 }
 0x1e8   :  { %541 = vsyncpa [#allocation8], 1 }
 0x1e9   :  { %543 = vsyncpa [#allocation8 + $0x1], 1 }
 0x1ea   :  { %544 = vsyncpa [#allocation4], 1 }
 0x1eb   :  { %546 = vsyncpa [#allocation4 + $0x1], 1 }
 0x1ec   :  { %547 = vsyncpa [#allocation5], 1 }
 0x1ed   :  { %549 = vsyncpa [#allocation5 + $0x1], 1 }

</bundles_post_ra>
